<compile_context>
chip_gen: v7x
topology: tpu7x:2x2x1
jax: 0.10.0
libtpu: 0.0.40
codegen_flags: <defaults>
</compile_context>

<pallas_src>
import jax
import jax.numpy as jnp
from jax.experimental import pallas as pl
from jax.experimental.pallas import tpu as pltpu


HIDDEN = 128
TILE_B = 2048      # max rows per grid step (~5-6 MiB VMEM incl. double buffers)
SMALL_TILE = 128   # fixed block for tiny act()-style batches (no per-B recompiles)


def _choose_tile(batch, tile_b=TILE_B, small_tile=SMALL_TILE):
    """Pick a power-of-two*128 batch tile.

    Keeps the grid at >=2 steps when batch > tile (v7x has 2 TensorCores and
    shards the 'parallel' axis across them), and restricts block shapes to a
    small set so the Mosaic compile cache stays bounded.
    """
    if batch <= small_tile:
        return small_tile
    tb = tile_b
    while tb > small_tile and pl.cdiv(batch, tb) < 2:
        tb //= 2
    return tb


# ----------------------------------------------------------------------------
# Batch-major kernel: x (tb, in_dim) -> out (tb, out_dim)
# ----------------------------------------------------------------------------
def _mlp_kernel(x_ref, w1_ref, b1_ref, w2_ref, b2_ref, o_ref):
    h = jnp.dot(x_ref[...], w1_ref[...],
                preferred_element_type=jnp.float32) + b1_ref[...]
    h = jnp.maximum(h, 0.0)                                     # ReLU
    out = jnp.dot(h.astype(w2_ref.dtype), w2_ref[...],
                  preferred_element_type=jnp.float32) + b2_ref[...]
    o_ref[...] = out.astype(o_ref.dtype)


def pi_forward(x, w1, b1, w2, b2, *, use_bf16=False):
    """Forward pass of Pi (batch-major).

    x: (B, in_dim).  w1: (in_dim, 128), w2: (128, out_dim) (transposed w.r.t.
    PyTorch's nn.Linear weights).  b1/b2: (1, features) rows.
    Returns (B, out_dim) f32 logits.
    """
    B, in_dim = x.shape
    hidden = w1.shape[1]
    out_dim = w2.shape[1]
    tb = _choose_tile(B)

    if use_bf16:  # v6e/v7x lever; keeps f32 accumulate + f32 bias adds.
        x = x.astype(jnp.bfloat16)
        w1 = w1.astype(jnp.bfloat16)
        w2 = w2.astype(jnp.bfloat16)

    return pl.pallas_call(
        _mlp_kernel,
        out_shape=jax.ShapeDtypeStruct((B, out_dim), jnp.float32),
        grid=(pl.cdiv(B, tb),),                       # ragged last block is fine
        in_specs=[
            pl.BlockSpec((tb, in_dim), lambda i: (i, 0)),        # x tile
            pl.BlockSpec((in_dim, hidden), lambda i: (0, 0)),    # w1 (resident)
            pl.BlockSpec((1, hidden), lambda i: (0, 0)),         # b1 (resident)
            pl.BlockSpec((hidden, out_dim), lambda i: (0, 0)),   # w2 (resident)
            pl.BlockSpec((1, out_dim), lambda i: (0, 0)),        # b2 (resident)
        ],
        out_specs=pl.BlockSpec((tb, out_dim), lambda i: (i, 0)),
        compiler_params=pltpu.CompilerParams(
            dimension_semantics=("parallel",)),
    )(x, w1, b1, w2, b2)


# ----------------------------------------------------------------------------
# Feature-major kernel (lane-dense): x^T (in_dim, tb) -> out^T (out_dim, tb).
# Batch sits on the 128-lane axis, so x loads and the output store are
# unmasked and dense.  Intended for large rollout batches where the caller can
# keep data feature-major (avoid transposing a huge (B, in_dim) array just to
# call this).
# ----------------------------------------------------------------------------
def _mlp_fm_kernel(xt_ref, w1t_ref, b1t_ref, w2t_ref, b2t_ref, ot_ref):
    ht = jnp.dot(w1t_ref[...], xt_ref[...],
                 preferred_element_type=jnp.float32) + b1t_ref[...]
    ht = jnp.maximum(ht, 0.0)
    ot = jnp.dot(w2t_ref[...], ht.astype(w2t_ref.dtype),
                 preferred_element_type=jnp.float32) + b2t_ref[...]
    ot_ref[...] = ot.astype(ot_ref.dtype)


def pi_forward_feature_major(x_t, w1, b1, w2, b2, *, use_bf16=False):
    """Forward pass of Pi on feature-major data.

    x_t: (in_dim, B).  Returns (out_dim, B) f32 logits (transposed).
    Same parameter set as pi_forward; the tiny weight transposes / bias
    reshapes happen once in the wrapper.
    """
    in_dim, B = x_t.shape
    hidden = w1.shape[1]
    out_dim = w2.shape[1]
    tb = _choose_tile(B)

    w1t = w1.T                       # (hidden, in_dim)  — tiny
    w2t = w2.T                       # (out_dim, hidden) — tiny
    b1t = b1.reshape(hidden, 1)
    b2t = b2.reshape(out_dim, 1)

    if use_bf16:
        x_t = x_t.astype(jnp.bfloat16)
        w1t = w1t.astype(jnp.bfloat16)
        w2t = w2t.astype(jnp.bfloat16)

    return pl.pallas_call(
        _mlp_fm_kernel,
        out_shape=jax.ShapeDtypeStruct((out_dim, B), jnp.float32),
        grid=(pl.cdiv(B, tb),),
        in_specs=[
            pl.BlockSpec((in_dim, tb), lambda i: (0, i)),        # x^T tile
            pl.BlockSpec((hidden, in_dim), lambda i: (0, 0)),    # w1^T (resident)
            pl.BlockSpec((hidden, 1), lambda i: (0, 0)),         # b1 column
            pl.BlockSpec((out_dim, hidden), lambda i: (0, 0)),   # w2^T (resident)
            pl.BlockSpec((out_dim, 1), lambda i: (0, 0)),        # b2 column
        ],
        out_specs=pl.BlockSpec((out_dim, tb), lambda i: (0, i)),
        compiler_params=pltpu.CompilerParams(
            dimension_semantics=("parallel",)),
    )(x_t, w1t, b1t, w2t, b2t)


def init_pi_params(key, in_dim, out_dim, hidden=HIDDEN):
    """nn.Linear-style U(-1/sqrt(fan_in), +1/sqrt(fan_in)) init.

    Weights are (in_features, out_features); biases are (1, out_features) rows
    so the batch-major kernel needs no per-call reshape.
    """
    k1, k2, k3, k4 = jax.random.split(key, 4)
    lim1 = 1.0 / jnp.sqrt(jnp.float32(in_dim))
    lim2 = 1.0 / jnp.sqrt(jnp.float32(hidden))
    w1 = jax.random.uniform(k1, (in_dim, hidden), jnp.float32, -lim1, lim1)
    b1 = jax.random.uniform(k2, (1, hidden), jnp.float32, -lim1, lim1)
    w2 = jax.random.uniform(k3, (hidden, out_dim), jnp.float32, -lim2, lim2)
    b2 = jax.random.uniform(k4, (1, out_dim), jnp.float32, -lim2, lim2)
    return w1, b1, w2, b2


if __name__ == "__main__":
    # TODO(synk): act()'s Categorical sampling / log_prob bookkeeping is a
    # host-side RL loop concern, not part of the forward pass kernel.

    # CartPole-like dims: in_dim=4 observations, out_dim=2 actions.
    in_dim, out_dim = 4, 2
    key = jax.random.PRNGKey(0)
    kp, kx1, kx2, kx3 = jax.random.split(key, 4)
    w1, b1, w2, b2 = init_pi_params(kp, in_dim, out_dim)

    def ref_fwd(x):
        return jnp.maximum(x @ w1 + b1, 0.0) @ w2 + b2

    # 1) Tiny act()-style batch: single ragged 128-row block (fixed block size
    #    so varying tiny batch sizes reuse the same compile).
    x_small = jax.random.normal(kx1, (2, in_dim), jnp.float32)
    out_small = pi_forward(x_small, w1, b1, w2, b2)
    jax.block_until_ready(out_small)
    assert out_small.shape == (2, out_dim)
    assert jnp.allclose(out_small, ref_fwd(x_small), atol=1e-4, rtol=1e-4)

    # 2) Rollout-sized batch: 2 grid steps of 512 rows, ragged last block,
    #    no wrapper pad/slice.
    x_big = jax.random.normal(kx2, (1000, in_dim), jnp.float32)
    out_big = pi_forward(x_big, w1, b1, w2, b2)
    jax.block_until_ready(out_big)
    assert out_big.shape == (1000, out_dim)
    assert jnp.allclose(out_big, ref_fwd(x_big), atol=1e-4, rtol=1e-4)

    # 3) Full TILE_B path: 2 grid steps of 2048 rows, ragged last block.
    x_huge = jax.random.normal(kx3, (2500, in_dim), jnp.float32)
    out_huge = pi_forward(x_huge, w1, b1, w2, b2)
    jax.block_until_ready(out_huge)
    assert out_huge.shape == (2500, out_dim)
    assert jnp.allclose(out_huge, ref_fwd(x_huge), atol=1e-4, rtol=1e-4)

    # 4) Lane-dense feature-major variant (batch on the 128-lane axis).
    out_fm = pi_forward_feature_major(x_big.T, w1, b1, w2, b2)
    jax.block_until_ready(out_fm)
    assert out_fm.shape == (out_dim, 1000)
    assert jnp.allclose(out_fm, ref_fwd(x_big).T, atol=1e-4, rtol=1e-4)

    # 5) Optional bf16-input path (v6e/v7x lever; intentionally not bit-exact
    #    with the f32 PyTorch module).
    out_bf16 = pi_forward(x_big, w1, b1, w2, b2, use_bf16=True)
    jax.block_until_ready(out_bf16)
    assert jnp.allclose(out_bf16, ref_fwd(x_big), atol=5e-2, rtol=5e-2)

    print("KERNEL_OK")
</pallas_src>

<mosaic_0001>
module attributes {stable_mosaic.version = 11 : i64} {
  func.func @_mlp_kernel(%arg0: i32, %arg1: memref<128x4xf32, #tpu.memory_space<vmem>>, %arg2: memref<4x128xf32, #tpu.memory_space<vmem>>, %arg3: memref<1x128xf32, #tpu.memory_space<vmem>>, %arg4: memref<128x2xf32, #tpu.memory_space<vmem>>, %arg5: memref<1x2xf32, #tpu.memory_space<vmem>>, %arg6: memref<128x2xf32, #tpu.memory_space<vmem>>) attributes {dimension_semantics = [#tpu.dimension_semantics<parallel>], iteration_bounds = array<i64: 1>, scalar_prefetch = 0 : i64, scratch_operands = 0 : i64, tpu.core_type = #tpu.core_type<tc>, window_params = [{transform_indices = @transform_0, window_bounds = array<i64: 128, 4>}, {pipeline_mode = #tpu.pipeline_mode<synchronous>, transform_indices = @transform_1, window_bounds = array<i64: 4, 128>}, {pipeline_mode = #tpu.pipeline_mode<synchronous>, transform_indices = @transform_2, window_bounds = array<i64: 1, 128>}, {pipeline_mode = #tpu.pipeline_mode<synchronous>, transform_indices = @transform_3, window_bounds = array<i64: 128, 2>}, {pipeline_mode = #tpu.pipeline_mode<synchronous>, transform_indices = @transform_4, window_bounds = array<i64: 1, 2>}, {transform_indices = @transform_5, window_bounds = array<i64: 128, 2>}]} {
    %c0 = arith.constant 0 : index
    %c0_0 = arith.constant 0 : index
    %0 = vector.load %arg1[%c0, %c0_0] : memref<128x4xf32, #tpu.memory_space<vmem>>, vector<128x4xf32>
    %c0_1 = arith.constant 0 : index
    %c0_2 = arith.constant 0 : index
    %1 = vector.load %arg2[%c0_1, %c0_2] : memref<4x128xf32, #tpu.memory_space<vmem>>, vector<4x128xf32>
    %cst = arith.constant dense<0.000000e+00> : vector<128x128xf32>
    %2 = tpu.matmul %0, %1, %cst {dimension_numbers = #tpu.dot_dimension_numbers<[1], [0], [0], [1], [0, 0, 1, 1], [], []>} : vector<128x4xf32>, vector<4x128xf32>, vector<128x128xf32> -> vector<128x128xf32>
    %c0_3 = arith.constant 0 : index
    %c0_4 = arith.constant 0 : index
    %3 = vector.load %arg3[%c0_3, %c0_4] : memref<1x128xf32, #tpu.memory_space<vmem>>, vector<1x128xf32>
    %4 = vector.broadcast %3 : vector<1x128xf32> to vector<128x128xf32>
    %5 = arith.addf %2, %4 : vector<128x128xf32>
    %cst_5 = arith.constant 0.000000e+00 : f32
    %6 = vector.broadcast %cst_5 : f32 to vector<128x128xf32>
    %7 = arith.maximumf %5, %6 : vector<128x128xf32>
    %c0_6 = arith.constant 0 : index
    %c0_7 = arith.constant 0 : index
    %8 = vector.load %arg4[%c0_6, %c0_7] : memref<128x2xf32, #tpu.memory_space<vmem>>, vector<128x2xf32>
    %cst_8 = arith.constant dense<0.000000e+00> : vector<128x2xf32>
    %9 = tpu.matmul %7, %8, %cst_8 {dimension_numbers = #tpu.dot_dimension_numbers<[1], [0], [0], [1], [0, 0, 1, 1], [], []>} : vector<128x128xf32>, vector<128x2xf32>, vector<128x2xf32> -> vector<128x2xf32>
    %c0_9 = arith.constant 0 : index
    %c0_10 = arith.constant 0 : index
    %10 = vector.load %arg5[%c0_9, %c0_10] : memref<1x2xf32, #tpu.memory_space<vmem>>, vector<1x2xf32>
    %11 = vector.broadcast %10 : vector<1x2xf32> to vector<128x2xf32>
    %12 = arith.addf %9, %11 : vector<128x2xf32>
    %c0_11 = arith.constant 0 : index
    %c0_12 = arith.constant 0 : index
    %13 = vector.load %arg6[%c0_11, %c0_12] : memref<128x2xf32, #tpu.memory_space<vmem>>, vector<128x2xf32>
    tpu.vector_store %arg6[%c0_11, %c0_12], %12 {strides = array<i32>} : memref<128x2xf32, #tpu.memory_space<vmem>>, vector<128x2xf32>,
    return
  }
  func.func @transform_0(%arg0: i32) -> (i32, i32) {
    %c0_i32 = arith.constant 0 : i32
    %c0_i32_0 = arith.constant 0 : i32
    return %arg0, %c0_i32 : i32, i32
  }
  func.func @transform_1(%arg0: i32) -> (i32, i32) {
    %c0_i32 = arith.constant 0 : i32
    %c0_i32_0 = arith.constant 0 : i32
    %c0_i32_1 = arith.constant 0 : i32
    return %c0_i32, %c0_i32_0 : i32, i32
  }
  func.func @transform_2(%arg0: i32) -> (i32, i32) {
    %c0_i32 = arith.constant 0 : i32
    %c0_i32_0 = arith.constant 0 : i32
    %c0_i32_1 = arith.constant 0 : i32
    return %c0_i32, %c0_i32_0 : i32, i32
  }
  func.func @transform_3(%arg0: i32) -> (i32, i32) {
    %c0_i32 = arith.constant 0 : i32
    %c0_i32_0 = arith.constant 0 : i32
    %c0_i32_1 = arith.constant 0 : i32
    return %c0_i32, %c0_i32_0 : i32, i32
  }
  func.func @transform_4(%arg0: i32) -> (i32, i32) {
    %c0_i32 = arith.constant 0 : i32
    %c0_i32_0 = arith.constant 0 : i32
    %c0_i32_1 = arith.constant 0 : i32
    return %c0_i32, %c0_i32_0 : i32, i32
  }
  func.func @transform_5(%arg0: i32) -> (i32, i32) {
    %c0_i32 = arith.constant 0 : i32
    %c0_i32_0 = arith.constant 0 : i32
    return %arg0, %c0_i32 : i32, i32
  }
}

</mosaic_0001>

<bundles_post_ra>
// kernel: tpu_custom_call.1
= control target key start
LH: loop header
LB: loop body
LE: loop exit
PB: predicated region body
PF: predicated region fallthrough
CT: control target
= control target key end

     0   :  { %10 = vsyncpa [#allocation3], 0  ;;  %vm94_vm0 = vcmask 1043456   ;;  %vm45_vm1 = vcmask 31744   ;;  %vm427_vm2 = vcmask 15360   ;;  %s867_s0 = inlined_call_operand.vmem [shape: f32[2,4], index: 0, kind: input, shape index: {}]   ;;  %s868_s1 = inlined_call_operand.vmem [shape: f32[4,128], index: 1, kind: input, shape index: {}]   ;;  %s869_s2 = inlined_call_operand.vmem [shape: f32[1,128], index: 2, kind: input, shape index: {}]   ;;  %s870_s3 = inlined_call_operand.vmem [shape: f32[128,2], index: 3, kind: input, shape index: {}]   ;;  %s871_s4 = inlined_call_operand.vmem [shape: f32[1,2], index: 4, kind: input, shape index: {}]   ;;  %s872_s5 = inlined_call_operand.hbm [shape: f32[2,2], index: 5, kind: output, shape index: {}]  }
   0x1   :  { %v37_v0 = vld [vmem:[%s868_s1] sm:$0xf]  ;;  %v22_v2 = vld [vmem:[%s867_s0 + $0x8] sm:$0xff]  ;;  %v23_v3 = vld [vmem:[%s867_s0 + $0x10] sm:$0xff] }
   0x2   :  { %v21_v1 = vld [vmem:[%s867_s0] sm:$0xff]  ;;  %528 = vmatprep.subr.msk.mxu0 %vm94_vm0, %v37_v0  ;;  %v24_v4 = vld [vmem:[%s867_s0 + $0x18] sm:$0xff]  ;;  %v260_v7 = vld [vmem:[%s870_s3 + $0x8] sm:$0xff] }
   0x3   :  { %529 = vmatpush3.msk.msra.mxu0 %vm94_vm0, %v37_v0  ;;  %530 = vmatprep.mubr.msk.f32.mxu0 %vm45_vm1, %v21_v1  ;;  %v25_v5 = vld [vmem:[%s867_s0 + $0x20] sm:$0xff]  ;;  %v261_v8 = vld [vmem:[%s870_s3 + $0x10] sm:$0xff]  ;;  %v262_v10 = vld [vmem:[%s870_s3 + $0x18] sm:$0xff] }
   0x4   :  { %531 = vmatmul.mubr.msk.f32.vlgmr.msra.gmra.mrb[0].mxu0 %vm45_vm1, %v22_v2  ;;  %v259_v6 = vld [vmem:[%s870_s3] sm:$0xff]  ;;  %v26_v11 = vld [vmem:[%s867_s0 + $0x28] sm:$0xff]  ;;  %v614_v12 = vpack.c.bf16 %v262_v10, %v261_v8  ;;  %v27_v15 = vld [vmem:[%s867_s0 + $0x30] sm:$0xff] }
   0x5   :  { %533 = vmatprep.mubr.msk.f32.mxu0 %vm45_vm1, %v23_v3  ;;  %v610_v9 = vpack.c.bf16 %v260_v7, %v259_v6  ;;  %v263_v13 = vld [vmem:[%s870_s3 + $0x20] sm:$0xff]  ;;  %v264_v14 = vld [vmem:[%s870_s3 + $0x28] sm:$0xff]  ;;  %v28_v17 = vld [vmem:[%s867_s0 + $0x38] sm:$0xff] }
   0x6   :  { %v618_v16 = vpack.c.bf16 %v264_v14, %v263_v13  ;;  %v265_v18 = vld [vmem:[%s870_s3 + $0x30] sm:$0xff]  ;;  %v266_v19 = vld [vmem:[%s870_s3 + $0x38] sm:$0xff]  ;;  %v29_v20 = vld [vmem:[%s867_s0 + $0x40] sm:$0xff] }
   0x7   :  { %611 = vmatprep.subr.bf16.mxu0 %v610_v9  ;;  %642 = vmatprep.subr.bf16.mxu1 %v610_v9  ;;  %v622_v21 = vpack.c.bf16 %v266_v19, %v265_v18  ;;  %v30_v22 = vld [vmem:[%s867_s0 + $0x48] sm:$0xff]  ;;  %v267_v23 = vld [vmem:[%s870_s3 + $0x40] sm:$0xff]  ;;  %v31_v25 = vld [vmem:[%s867_s0 + $0x50] sm:$0xff] }
   0x8   :  { %534 = vmatmul.mubr.msk.f32.gmra.mrb[2].mxu0 %vm45_vm1, %v24_v4  ;;  %650 = vmatpush3.bf16.msra.mxu1 %v610_v9  ;;  %v268_v24 = vld [vmem:[%s870_s3 + $0x48] sm:$0xff]  ;;  %v32_v27 = vld [vmem:[%s867_s0 + $0x58] sm:$0xff]  ;;  %v269_v28 = vld [vmem:[%s870_s3 + $0x50] sm:$0xff] }
   0x9   :  { %536 = vmatprep.mubr.msk.f32.mxu0 %vm45_vm1, %v25_v5  ;;  %613 = vmatpush3.bf16.msra.mxu0 %v610_v9  ;;  %v626_v26 = vpack.c.bf16 %v268_v24, %v267_v23  ;;  %v270_v29 = vld [vmem:[%s870_s3 + $0x58] sm:$0xff]  ;;  %v33_v30 = vld [vmem:[%s867_s0 + $0x60] sm:$0xff]  ;;  %v34_v32 = vld [vmem:[%s867_s0 + $0x68] sm:$0xff] }
   0xa   :  { %615 = vmatprep.subr.bf16.mxu0 %v614_v12  ;;  %643 = vmatprep.subr.bf16.mxu1 %v614_v12  ;;  %v630_v31 = vpack.c.bf16 %v270_v29, %v269_v28  ;;  %v271_v33 = vld [vmem:[%s870_s3 + $0x60] sm:$0xff]  ;;  %v272_v34 = vld [vmem:[%s870_s3 + $0x68] sm:$0xff]  ;;  %v35_v35 = vld [vmem:[%s867_s0 + $0x70] sm:$0xff] }
   0xb   :  { %v634_v36 = vpack.c.bf16 %v272_v34, %v271_v33  ;;  %v36_v37 = vld [vmem:[%s867_s0 + $0x78] sm:$0xff]  ;;  %v273_v38 = vld [vmem:[%s870_s3 + $0x70] sm:$0xff]  ;;  %v460_v41 = vld [vmem:[%s869_s2] ss:$0 sm:$0xff] }
   0xc   :  { %537 = vmatmul.mubr.msk.f32.gmra.mrb[4].mxu0 %vm45_vm1, %v26_v11  ;;  %651 = vmatpush3.bf16.msra.mxu1 %v614_v12  ;;  %v274_v39 = vld [vmem:[%s870_s3 + $0x78] sm:$0xff] }
   0xd   :  { %539 = vmatprep.mubr.msk.f32.mxu0 %vm45_vm1, %v27_v15  ;;  %617 = vmatpush3.bf16.msra.mxu0 %v614_v12  ;;  %v638_v40 = vpack.c.bf16 %v274_v39, %v273_v38 }
   0xe   :  { %619 = vmatprep.subr.bf16.mxu0 %v618_v16  ;;  %644 = vmatprep.subr.bf16.mxu1 %v618_v16 }
  0x10   :  { %540 = vmatmul.mubr.msk.f32.gmra.mrb[6].mxu0 %vm45_vm1, %v28_v17  ;;  %652 = vmatpush3.bf16.msra.mxu1 %v618_v16 }
  0x11   :  { %542 = vmatprep.mubr.msk.f32.mxu0 %vm45_vm1, %v29_v20  ;;  %621 = vmatpush3.bf16.msra.mxu0 %v618_v16 }
  0x12   :  { %623 = vmatprep.subr.bf16.mxu0 %v622_v21  ;;  %645 = vmatprep.subr.bf16.mxu1 %v622_v21 }
  0x14   :  { %543 = vmatmul.mubr.msk.f32.gmra.mrb[8].mxu0 %vm45_vm1, %v30_v22  ;;  %653 = vmatpush3.bf16.msra.mxu1 %v622_v21 }
  0x15   :  { %545 = vmatprep.mubr.msk.f32.mxu0 %vm45_vm1, %v31_v25  ;;  %625 = vmatpush3.bf16.msra.mxu0 %v622_v21 }
  0x16   :  { %627 = vmatprep.subr.bf16.mxu0 %v626_v26  ;;  %646 = vmatprep.subr.bf16.mxu1 %v626_v26 }
  0x18   :  { %546 = vmatmul.mubr.msk.f32.gmra.mrb[10].mxu0 %vm45_vm1, %v32_v27  ;;  %654 = vmatpush3.bf16.msra.mxu1 %v626_v26 }
  0x19   :  { %548 = vmatprep.mubr.msk.f32.mxu0 %vm45_vm1, %v33_v30  ;;  %629 = vmatpush3.bf16.msra.mxu0 %v626_v26  ;;  %v478_v26 = vld [vmem:[%s871_s4] ss:$0 sm:$0xff] }
  0x1a   :  { %631 = vmatprep.subr.bf16.mxu0 %v630_v31  ;;  %647 = vmatprep.subr.bf16.mxu1 %v630_v31 }
  0x1c   :  { %549 = vmatmul.mubr.msk.f32.gmra.mrb[12].mxu0 %vm45_vm1, %v34_v32  ;;  %655 = vmatpush3.bf16.msra.mxu1 %v630_v31 }
  0x1d   :  { %551 = vmatprep.mubr.msk.f32.mxu0 %vm45_vm1, %v35_v35  ;;  %633 = vmatpush3.bf16.msra.mxu0 %v630_v31 }
  0x1e   :  { %635 = vmatprep.subr.bf16.mxu0 %v634_v36  ;;  %648 = vmatprep.subr.bf16.mxu1 %v634_v36 }
  0x20   :  { %552 = vmatmul.mubr.msk.f32.gmra.mrb[14].mxu0 %vm45_vm1, %v36_v37  ;;  %656 = vmatpush3.bf16.msra.mxu1 %v634_v36 }
  0x21   :  { %637 = vmatpush3.bf16.msra.mxu0 %v634_v36  ;;  %649 = vmatprep.subr.bf16.mxu1 %v638_v40 }
  0x22   :  { %639 = vmatprep.subr.bf16.mxu0 %v638_v40 }
  0x24   :  { %657 = vmatpush3.bf16.msra.mxu1 %v638_v40 }
  0x25   :  { %641 = vmatpush3.bf16.msra.mxu0 %v638_v40 }
  0xd7   :  { %v532_v42 = vpop.f32.mrb[0].mxu0 }
  0xd8   :  { %v170_v43 = vadd.f32 %v532_v42, %v460_v41  ;;  %v164_v44 = vpop.f32.mrb[1].mxu0 }
  0xd9   :  { %v165_v45 = vadd.f32 %v460_v41, %v164_v44 }
  0xda   :  { %v244_v48 = vmax.f32 %v170_v43, 0.0 }
  0xdb   :  { %v243_v46 = vmax.f32 %v165_v45, 0.0  ;;  %v535_v47 = vpop.f32.mrb[2].mxu0 }
  0xdc   :  { %v180_v49 = vadd.f32 %v535_v47, %v460_v41  ;;  %v174_v50 = vpop.f32.mrb[3].mxu0 }
  0xdd   :  { %v175_v51 = vadd.f32 %v460_v41, %v174_v50  ;;  %586 = vmatprep.mubr.f32.mxu0 %v243_v46 }
  0xde   :  { %587 = vmatmul.mubr.f32.vlgmr.msra.gmra.mrb[16].mxu0 %v244_v48  ;;  %v246_v54 = vmax.f32 %v180_v49, 0.0 }
  0xdf   :  { %v245_v52 = vmax.f32 %v175_v51, 0.0  ;;  %v538_v53 = vpop.f32.mrb[4].mxu0 }
  0xe0   :  { %v190_v55 = vadd.f32 %v538_v53, %v460_v41  ;;  %v184_v56 = vpop.f32.mrb[5].mxu0 }
  0xe1   :  { %v185_v57 = vadd.f32 %v460_v41, %v184_v56  ;;  %589 = vmatprep.mubr.f32.mxu0 %v245_v52 }
  0xe2   :  { %590 = vmatmul.mubr.f32.gmra.mrb[18].mxu0 %v246_v54  ;;  %v248_v60 = vmax.f32 %v190_v55, 0.0 }
  0xe3   :  { %v247_v58 = vmax.f32 %v185_v57, 0.0  ;;  %v541_v59 = vpop.f32.mrb[6].mxu0 }
  0xe4   :  { %v200_v61 = vadd.f32 %v541_v59, %v460_v41  ;;  %v194_v62 = vpop.f32.mrb[7].mxu0 }
  0xe5   :  { %592 = vmatprep.mubr.f32.mxu0 %v247_v58  ;;  %v195_v63 = vadd.f32 %v460_v41, %v194_v62 }
  0xe6   :  { %593 = vmatmul.mubr.f32.gmra.mrb[20].mxu0 %v248_v60  ;;  %v250_v2 = vmax.f32 %v200_v61, 0.0 }
  0xe7   :  { %v544_v0 = vpop.f32.mrb[8].mxu0  ;;  %v249_v1 = vmax.f32 %v195_v63, 0.0 }
  0xe8   :  { %v210_v3 = vadd.f32 %v544_v0, %v460_v41  ;;  %v204_v4 = vpop.f32.mrb[9].mxu0 }
  0xe9   :  { %v205_v5 = vadd.f32 %v460_v41, %v204_v4  ;;  %595 = vmatprep.mubr.f32.mxu1 %v249_v1 }
  0xea   :  { %596 = vmatmul.mubr.f32.vlgmr.msra.gmra.mrb[0].mxu1 %v250_v2  ;;  %v252_v8 = vmax.f32 %v210_v3, 0.0 }
  0xeb   :  { %v251_v6 = vmax.f32 %v205_v5, 0.0  ;;  %v547_v7 = vpop.f32.mrb[10].mxu0 }
  0xec   :  { %v220_v9 = vadd.f32 %v547_v7, %v460_v41  ;;  %v214_v10 = vpop.f32.mrb[11].mxu0 }
  0xed   :  { %v215_v11 = vadd.f32 %v460_v41, %v214_v10  ;;  %598 = vmatprep.mubr.f32.mxu1 %v251_v6 }
  0xee   :  { %599 = vmatmul.mubr.f32.gmra.mrb[2].mxu1 %v252_v8  ;;  %v254_v14 = vmax.f32 %v220_v9, 0.0 }
  0xef   :  { %v253_v12 = vmax.f32 %v215_v11, 0.0  ;;  %v550_v13 = vpop.f32.mrb[12].mxu0 }
  0xf0   :  { %v230_v15 = vadd.f32 %v550_v13, %v460_v41  ;;  %v224_v16 = vpop.f32.mrb[13].mxu0 }
  0xf1   :  { %v225_v17 = vadd.f32 %v460_v41, %v224_v16  ;;  %601 = vmatprep.mubr.f32.mxu1 %v253_v12 }
  0xf2   :  { %602 = vmatmul.mubr.f32.gmra.mrb[4].mxu1 %v254_v14  ;;  %v256_v20 = vmax.f32 %v230_v15, 0.0 }
  0xf3   :  { %v255_v18 = vmax.f32 %v225_v17, 0.0  ;;  %v553_v19 = vpop.f32.mrb[14].mxu0 }
  0xf4   :  { %v240_v21 = vadd.f32 %v553_v19, %v460_v41  ;;  %v234_v22 = vpop.f32.mrb[15].mxu0 }
  0xf5   :  { %v235_v23 = vadd.f32 %v460_v41, %v234_v22  ;;  %604 = vmatprep.mubr.f32.mxu1 %v255_v18 }
  0xf6   :  { %605 = vmatmul.mubr.f32.gmra.mrb[6].mxu1 %v256_v20  ;;  %v258_v25 = vmax.f32 %v240_v21, 0.0 }
  0xf7   :  { %v257_v24 = vmax.f32 %v235_v23, 0.0 }
  0xf9   :  { %607 = vmatprep.mubr.f32.mxu1 %v257_v24 }
  0xfa   :  { %608 = vmatmul.mubr.f32.gmra.mrb[8].mxu1 %v258_v25 }
 0x1b1   :  { %v588_v27 = vpop.f32.mrb[16].mxu0 }
 0x1b2   :  { %v354_v28 = vadd.f32 %v588_v27, %v478_v26  ;;  %v348_v29 = vpop.f32.mrb[17].mxu0 }
 0x1b3   :  { %v349_v30 = vadd.f32 %v478_v26, %v348_v29 }
 0x1b4   :  { %429 = vst.msk [vmem:[#allocation2 + $0x8] sm:$0xff] %vm427_vm2, %v354_v28 }
 0x1b5   :  { %428 = vst.msk [vmem:[#allocation2] sm:$0xff] %vm427_vm2, %v349_v30  ;;  %v591_v31 = vpop.f32.mrb[18].mxu0 }
 0x1b6   :  { %v364_v32 = vadd.f32 %v591_v31, %v478_v26  ;;  %v358_v33 = vpop.f32.mrb[19].mxu0 }
 0x1b7   :  { %v359_v34 = vadd.f32 %v478_v26, %v358_v33 }
 0x1b8   :  { %431 = vst.msk [vmem:[#allocation2 + $0x18] sm:$0xff] %vm427_vm2, %v364_v32 }
 0x1b9   :  { %430 = vst.msk [vmem:[#allocation2 + $0x10] sm:$0xff] %vm427_vm2, %v359_v34  ;;  %v594_v35 = vpop.f32.mrb[20].mxu0 }
 0x1ba   :  { %v374_v36 = vadd.f32 %v594_v35, %v478_v26  ;;  %v368_v37 = vpop.f32.mrb[21].mxu0 }
 0x1bb   :  { %v369_v38 = vadd.f32 %v478_v26, %v368_v37 }
 0x1bc   :  { %433 = vst.msk [vmem:[#allocation2 + $0x28] sm:$0xff] %vm427_vm2, %v374_v36 }
 0x1bd   :  { %432 = vst.msk [vmem:[#allocation2 + $0x20] sm:$0xff] %vm427_vm2, %v369_v38  ;;  %v597_v39 = vpop.f32.mrb[0].mxu1 }
 0x1be   :  { %v384_v40 = vadd.f32 %v597_v39, %v478_v26  ;;  %v378_v41 = vpop.f32.mrb[1].mxu1 }
 0x1bf   :  { %v379_v42 = vadd.f32 %v478_v26, %v378_v41 }
 0x1c0   :  { %435 = vst.msk [vmem:[#allocation2 + $0x38] sm:$0xff] %vm427_vm2, %v384_v40 }
 0x1c1   :  { %434 = vst.msk [vmem:[#allocation2 + $0x30] sm:$0xff] %vm427_vm2, %v379_v42  ;;  %v600_v43 = vpop.f32.mrb[2].mxu1 }
 0x1c2   :  { %v394_v44 = vadd.f32 %v600_v43, %v478_v26  ;;  %v388_v45 = vpop.f32.mrb[3].mxu1 }
 0x1c3   :  { %v389_v46 = vadd.f32 %v478_v26, %v388_v45 }
 0x1c4   :  { %437 = vst.msk [vmem:[#allocation2 + $0x48] sm:$0xff] %vm427_vm2, %v394_v44 }
 0x1c5   :  { %436 = vst.msk [vmem:[#allocation2 + $0x40] sm:$0xff] %vm427_vm2, %v389_v46  ;;  %v603_v47 = vpop.f32.mrb[4].mxu1 }
 0x1c6   :  { %v404_v48 = vadd.f32 %v603_v47, %v478_v26  ;;  %v398_v49 = vpop.f32.mrb[5].mxu1 }
 0x1c7   :  { %v399_v50 = vadd.f32 %v478_v26, %v398_v49 }
 0x1c8   :  { %439 = vst.msk [vmem:[#allocation2 + $0x58] sm:$0xff] %vm427_vm2, %v404_v48 }
 0x1c9   :  { %438 = vst.msk [vmem:[#allocation2 + $0x50] sm:$0xff] %vm427_vm2, %v399_v50  ;;  %v606_v51 = vpop.f32.mrb[6].mxu1 }
 0x1ca   :  { %v414_v52 = vadd.f32 %v606_v51, %v478_v26  ;;  %v408_v53 = vpop.f32.mrb[7].mxu1 }
 0x1cb   :  { %v409_v54 = vadd.f32 %v478_v26, %v408_v53 }
 0x1cc   :  { %441 = vst.msk [vmem:[#allocation2 + $0x68] sm:$0xff] %vm427_vm2, %v414_v52 }
 0x1cd   :  { %440 = vst.msk [vmem:[#allocation2 + $0x60] sm:$0xff] %vm427_vm2, %v409_v54  ;;  %v609_v55 = vpop.f32.mrb[8].mxu1 }
 0x1ce   :  { %v424_v56 = vadd.f32 %v609_v55, %v478_v26  ;;  %v418_v57 = vpop.f32.mrb[9].mxu1 }
 0x1cf   :  { %v419_v58 = vadd.f32 %v478_v26, %v418_v57 }
 0x1d0   :  { %443 = vst.msk [vmem:[#allocation2 + $0x78] sm:$0xff] %vm427_vm2, %v424_v56 }
 0x1d1   :  { %442 = vst.msk [vmem:[#allocation2 + $0x70] sm:$0xff] %vm427_vm2, %v419_v58 }
 0x1d2   :  { %448 = vsyncadd [#allocation3], 2016  ;;  %s685_s4 = smov [#allocation2]  }
 0x1d3   :  { %s449_s7 = sshll.u32 %s685_s4, 4  ;;  %s450_s7 = int_to_ptr.vmem [resolvable:$true] %s449_s7 }
 0x1d4   :  { %s661_s8 = scalar_lea.vmem %s450_s7, 32  ;;  %s665_s9 = scalar_lea.vmem %s450_s7, 2048 }
 0x1d5   :  { %p662_p0 = scmp.ne.s32.totalorder %s450_s7, %s661_s8  ;;  %p666_p1 = scmp.lt.s32.totalorder %s450_s7, %s450_s7 }
 0x1d6   :  { %p667_p2 = scmp.lt.s32.totalorder %s665_s9, %s661_s8 }
 0x1d8   :  { %p668_p3 = por %p667_p2, %p666_p1 }
 0x1da   :  { %p669_p4 = pnand %p668_p3, %p662_p0 }
 0x1dc   :  { %672 = shalt.err (!%p669_p4)
}
 0x1dd   :  { %s673_s12 = scalar_lea.hbm %s872_s5, 32 }
 0x1de   :  { %p674_p5 = scmp.ne.s32.totalorder %s872_s5, %s673_s12  ;;  %p677_p6 = scmp.lt.u32.totalorder %s673_s12, %s872_s5 }
 0x1e0   :  { %p679_p7 = pnand %p677_p6, %p674_p5 }
 0x1e2   :  { %682 = shalt.err (!%p679_p7)
}
 0x1e3   :  { %s686_s17 = smov 32   ;;  %s687_s18 = smov 2  }
 0x1e4   :  { %455 = dma.vmem_to_hbm [thread:$0]  %s450_s7, 32, %s872_s5, [#allocation3], %s686_s17, %s686_s17, %s687_s18  }
 0x1e5   :  { %683 = dma.done.wait [#allocation3], 2048  }
 0x1e6   :  { %684 = vsyncadd [#allocation3], 4294965248 }
 0x1e7   :  { %459 = vsyncpa [#allocation3], 1 }

</bundles_post_ra>
